<compile_context>
chip_gen: v7x
topology: tpu7x:2x2x1
jax: 0.10.0
libtpu: 0.0.40
codegen_flags: <defaults>
</compile_context>

<pallas_src>
import functools
import math

import jax
import jax.numpy as jnp
from jax.experimental import pallas as pl
from jax.experimental.pallas import tpu as pltpu


def _round8(x):
    return ((x + 7) // 8) * 8


# ----------------------------------------------------------------------------
# Fused kernel: TopK_with_h + top-k select/gather + mat_GRU gates
# ----------------------------------------------------------------------------
def _fused_kernel(ht_ref, ne_ref, mask_ref, hT_ref, wp_ref, slab_ref, d_ref,
                  *, K, offs):
    f32 = jnp.float32
    B, N, Dg = ne_ref.shape
    _, R = hT_ref.shape
    Drnn = ht_ref.shape[1]

    # ---- static views into the single packed parameter array (one DMA) ----
    wm = wp_ref[offs["wm"]:offs["wm"] + Drnn, 0:Dg]            # [Drnn, Dg]
    bm = wp_ref[offs["bm"]:offs["bm"] + 1, 0:Dg]               # [1, Dg]
    w_allT = wp_ref[offs["wa"]:offs["wa"] + Dg, 0:3 * R]       # [Dg, 3R]  = [Wz;Wr;Wh]^T
    u_zrT = wp_ref[offs["uzr"]:offs["uzr"] + R, 0:2 * R]       # [R, 2R]   = [Uz;Ur]^T
    uhT = wp_ref[offs["uh"]:offs["uh"] + R, 0:R]               # [R, R]    = Uh^T
    b_allT = wp_ref[offs["ba"]:offs["ba"] + R, 0:3 * R]        # [R, 3R]   = [bz^T,br^T,bh^T]

    # ---------------- TopK_with_h scoring ----------------
    # scorer = tanh(ht @ Wm + bm)
    scorer = jnp.tanh(jnp.dot(ht_ref[...], wm, preferred_element_type=f32) + bm)  # [B, Dg]

    ne = ne_ref[...]                                                   # [B, N, Dg]
    raw = jnp.sum(ne * scorer[:, None, :], axis=-1)                    # [B, N]
    norm = jnp.sqrt(jnp.sum(scorer * scorer, axis=-1, keepdims=True))  # [B, 1]
    scores = raw / norm
    scores = jnp.where(mask_ref[...] > 0, f32(1e-9), scores)           # masked_fill

    # softmax / log-softmax / entropy over the node axis (exact divide)
    smax = jnp.max(scores, axis=-1, keepdims=True)
    e = jnp.exp(scores - smax)
    denom = jnp.sum(e, axis=-1, keepdims=True)
    logdenom = jnp.log(denom)
    p = e / denom
    logp = (scores - smax) - logdenom
    ent = -jnp.sum(p * logp, axis=-1, keepdims=True)                   # [B, 1]

    # -------- top-k (unrolled, scores-only: indices + values, no gathers) --------
    col = jax.lax.broadcasted_iota(jnp.int32, (B, N), 1).astype(f32)   # [B, N]
    neg = f32(-3.0e38)
    work = scores
    idx_list, val_list = [], []
    for _ in range(K):
        m = jnp.max(work, axis=-1, keepdims=True)                      # k-th largest score
        cand = jnp.where(work == m, col, f32(N))
        sel = jnp.min(cand, axis=-1, keepdims=True)                    # smallest index of max
        idx_list.append(sel)
        val_list.append(m)
        work = jnp.where(col == sel, neg, work)                        # mask picked node
    topk_f = jnp.concatenate(idx_list, axis=1)                         # [B, K] float ids
    vals = jnp.concatenate(val_list, axis=1)                           # [B, K] selected scores

    # policy = mean_k log_softmax(scores)[topk] = mean_k(vals) - smax - log(denom)
    policy = jnp.mean(vals, axis=-1, keepdims=True) - smax - logdenom  # [B, 1]

    # -------- single one-hot contraction gather on the MXU (tanh-scale folded in) --------
    col3 = jax.lax.broadcasted_iota(jnp.int32, (B, K, N), 2).astype(f32)
    oh = (topk_f[:, :, None] == col3).astype(f32)                      # [B, K, N]
    ohs = oh * jnp.tanh(vals)[:, :, None]                              # scaled one-hots
    xg = jnp.einsum('bkn,bnd->bkd', ohs, ne,
                    preferred_element_type=f32)                        # [B, K, Dg]
    X = xg.reshape(B * K, Dg)                                          # free reshape (row-major)

    # -------- mat_GRU gates, row-major transposed layout --------
    # hT_ref holds prev_H^T per batch stacked along rows: HT[b*R + c, :] = prev_H[b, :, c]
    HT = hT_ref[...]                                                   # [B*R, R]
    wx = jnp.dot(X, w_allT, preferred_element_type=f32) \
        + jnp.tile(b_allT, (B, 1))                                     # [B*R, 3R]
    uh = jnp.dot(HT, u_zrT, preferred_element_type=f32)                # [B*R, 2R]

    z = jax.nn.sigmoid(wx[:, 0:R] + uh[:, 0:R])                        # update^T
    r = jax.nn.sigmoid(wx[:, R:2 * R] + uh[:, R:2 * R])                # reset^T
    rh = r * HT                                                        # (reset*prev_H)^T
    htil = jnp.tanh(wx[:, 2 * R:3 * R]
                    + jnp.dot(rh, uhT, preferred_element_type=f32))    # htilda^T
    d_ref[...] = (1.0 - z) * HT + z * htil                             # D^T, [B*R, R]

    # -------- lane-dense scalar slab: direct sub-slice stores --------
    slab_ref[...] = jnp.zeros_like(slab_ref)
    slab_ref[:, 0:Dg] = scorer
    slab_ref[:, Dg:Dg + 1] = ent
    slab_ref[:, Dg + 1:Dg + 2] = policy
    slab_ref[:, Dg + 2:Dg + 2 + K] = topk_f


# ----------------------------------------------------------------------------
# Wrapper-side parameter packing (constant-folded under jit)
# ----------------------------------------------------------------------------
def _pack_weights(params, rows, cols, rnn_dim):
    """Pack all cell parameters into ONE padded 2-D f32 array (single DMA).

    Row offsets are multiples of 8 so every in-kernel static slice is
    sublane-aligned.  Gate matrices are pre-transposed for the row-major
    (x @ W^T) formulation used inside the kernel.
    """
    R = rows
    w_allT = jnp.concatenate([params["Wz"], params["Wr"], params["Wh"]], axis=0).T   # [Dg, 3R]
    u_zrT = jnp.concatenate([params["Uz"], params["Ur"]], axis=0).T                  # [R, 2R]
    uhT = params["Uh"].T                                                             # [R, R]
    b_allT = jnp.concatenate([params["bz"].T, params["br"].T, params["bh"].T],
                             axis=1)                                                 # [R, 3R]

    blocks = [("wm", params["Wm"]), ("bm", params["bm"]), ("wa", w_allT),
              ("uzr", u_zrT), ("uh", uhT), ("ba", b_allT)]
    width = max(b.shape[1] for _, b in blocks)
    offs, parts, row = {}, [], 0
    for name, b in blocks:
        offs[name] = row
        rr = _round8(b.shape[0])
        parts.append(jnp.pad(b.astype(jnp.float32),
                             ((0, rr - b.shape[0]), (0, width - b.shape[1]))))
        row += rr
    return jnp.concatenate(parts, axis=0), offs


# ----------------------------------------------------------------------------
# Full mat_GRU_cell.forward wrapper
# ----------------------------------------------------------------------------
def mat_gru_cell_forward(prev_H, node_embs, mask, ht, params, gcn_topk):
    B, N, Dg = node_embs.shape
    _, R, _ = prev_H.shape
    Drnn = ht.shape[1]
    K = gcn_topk
    assert K == R, "gcn_topk must equal rows for the GRU shapes to match"

    wpack, offs = _pack_weights(params, R, Dg, Drnn)   # constants under jit

    # prev_H^T per batch, row-major [B*R, R] (tiny per-call transpose in XLA)
    prev_HT = jnp.swapaxes(prev_H, 1, 2).reshape(B * R, R)

    used = Dg + 2 + K                                  # scorer | entropy | policy | topk
    slab_w = max(128, _round8(used))
    assert used <= slab_w

    kernel = functools.partial(_fused_kernel, K=K, offs=offs)

    z2 = lambda i: (0, 0)
    z3 = lambda i: (0, 0, 0)
    slab, d_t = pl.pallas_call(
        kernel,
        out_shape=(
            jax.ShapeDtypeStruct((B, slab_w), jnp.float32),   # lane-dense scalar slab
            jax.ShapeDtypeStruct((B * R, R), jnp.float32),    # D^T, batch row-major
        ),
        grid=(1,),
        in_specs=[
            pl.BlockSpec((B, Drnn), z2),            # ht
            pl.BlockSpec((B, N, Dg), z3),           # node_embs
            pl.BlockSpec((B, N), z2),               # mask
            pl.BlockSpec((B * R, R), z2),           # prev_H^T (row-major)
            pl.BlockSpec(wpack.shape, z2),          # packed weights (1 DMA)
        ],
        out_specs=[
            pl.BlockSpec((B, slab_w), z2),
            pl.BlockSpec((B * R, R), z2),
        ],
        compiler_params=pltpu.CompilerParams(
            dimension_semantics=("arbitrary",)),
    )(ht, node_embs, mask, prev_HT, wpack)

    scorer = slab[:, :Dg]                                     # [B, Dg]
    entropy = slab[:, Dg]                                     # [B]
    policy_score = slab[:, Dg + 1]                            # [B]
    topk_idx = slab[:, Dg + 2:Dg + 2 + K].astype(jnp.int32)   # [B, K]
    D = jnp.swapaxes(d_t.reshape(B, R, R), 1, 2)              # un-transpose D^T -> [B, R, R]

    return D, policy_score, scorer, entropy, topk_idx


# ----------------------------------------------------------------------------
# Deterministic parameter construction (matches module __init__ shapes)
# ----------------------------------------------------------------------------
def init_params(key, rnn_dim, gcn_dim, rows, cols):
    ks = jax.random.split(key, 3)
    lin_std = 1.0 / math.sqrt(rnn_dim)
    w_std = 1.0 / math.sqrt(cols)   # mat_GRU_gate.W: [rows, cols]
    u_std = 1.0 / math.sqrt(rows)   # mat_GRU_gate.U: [rows, rows]
    params = {
        # mapper = Linear(rnn_dim, gcn_dim); stored transposed for ht @ Wm
        "Wm": jax.random.uniform(ks[0], (rnn_dim, gcn_dim), jnp.float32,
                                 -lin_std, lin_std),
        "bm": jax.random.uniform(ks[1], (1, gcn_dim), jnp.float32,
                                 -lin_std, lin_std),
    }
    gate_keys = jax.random.split(ks[2], 6)
    for name, (kw, ku) in zip(("z", "r", "h"),
                              ((gate_keys[0], gate_keys[1]),
                               (gate_keys[2], gate_keys[3]),
                               (gate_keys[4], gate_keys[5]))):
        params[f"W{name}"] = jax.random.uniform(kw, (rows, cols), jnp.float32,
                                                -w_std, w_std)
        params[f"U{name}"] = jax.random.uniform(ku, (rows, rows), jnp.float32,
                                                -u_std, u_std)
        params[f"b{name}"] = jnp.zeros((rows, rows), jnp.float32)
    return params


if __name__ == "__main__":
    # small shapes implied by the module:
    #   batch=2, node_num=16, gcn_dim=cols=32, rnn_dim=32,
    #   gcn_topk=rows=8, prev_H: [batch, rows, rows]
    B, N, Dg, Drnn = 2, 16, 32, 32
    gcn_topk = 8
    rows, cols = gcn_topk, Dg

    key = jax.random.PRNGKey(0)
    k_ne, k_h, k_ht, k_m, k_p = jax.random.split(key, 5)

    node_embs = jax.random.normal(k_ne, (B, N, Dg), jnp.float32)
    prev_H = jax.random.normal(k_h, (B, rows, rows), jnp.float32)
    ht = jax.random.normal(k_ht, (B, Drnn), jnp.float32)
    mask = (jax.random.uniform(k_m, (B, N)) < 0.2).astype(jnp.float32)
    params = init_params(k_p, Drnn, Dg, rows, cols)

    fwd = jax.jit(lambda pH, ne, m, h: mat_gru_cell_forward(
        pH, ne, m, h, params, gcn_topk))

    D, policy_score, scorer, entropy, topk_idx = fwd(prev_H, node_embs, mask, ht)
    jax.block_until_ready((D, policy_score, scorer, entropy, topk_idx))

    assert D.shape == (B, rows, rows)
    assert policy_score.shape == (B,)
    assert scorer.shape == (B, Dg)
    assert entropy.shape == (B,)
    assert topk_idx.shape == (B, gcn_topk)
    print("KERNEL_OK")
</pallas_src>

<mosaic_0001>
module attributes {stable_mosaic.version = 11 : i64} {
  func.func @_fused_kernel(%arg0: i32, %arg1: memref<2x32xf32, #tpu.memory_space<vmem>>, %arg2: memref<2x16x32xf32, #tpu.memory_space<vmem>>, %arg3: memref<2x16xf32, #tpu.memory_space<vmem>>, %arg4: memref<16x8xf32, #tpu.memory_space<vmem>>, %arg5: memref<96x32xf32, #tpu.memory_space<vmem>>, %arg6: memref<2x128xf32, #tpu.memory_space<vmem>>, %arg7: memref<16x8xf32, #tpu.memory_space<vmem>>) attributes {dimension_semantics = [#tpu.dimension_semantics<arbitrary>], iteration_bounds = array<i64: 1>, scalar_prefetch = 0 : i64, scratch_operands = 0 : i64, tpu.core_type = #tpu.core_type<tc>, window_params = [{pipeline_mode = #tpu.pipeline_mode<synchronous>, transform_indices = @transform_0, window_bounds = array<i64: 2, 32>}, {pipeline_mode = #tpu.pipeline_mode<synchronous>, transform_indices = @transform_1, window_bounds = array<i64: 2, 16, 32>}, {pipeline_mode = #tpu.pipeline_mode<synchronous>, transform_indices = @transform_2, window_bounds = array<i64: 2, 16>}, {pipeline_mode = #tpu.pipeline_mode<synchronous>, transform_indices = @transform_3, window_bounds = array<i64: 16, 8>}, {pipeline_mode = #tpu.pipeline_mode<synchronous>, transform_indices = @transform_4, window_bounds = array<i64: 96, 32>}, {pipeline_mode = #tpu.pipeline_mode<synchronous>, transform_indices = @transform_5, window_bounds = array<i64: 2, 128>}, {pipeline_mode = #tpu.pipeline_mode<synchronous>, transform_indices = @transform_6, window_bounds = array<i64: 16, 8>}]} {
    %c0 = arith.constant 0 : index
    %c0_0 = arith.constant 0 : index
    %0 = vector.load %arg5[%c0, %c0_0] : memref<96x32xf32, #tpu.memory_space<vmem>>, vector<32x32xf32>
    %c32 = arith.constant 32 : index
    %c0_1 = arith.constant 0 : index
    %1 = vector.load %arg5[%c32, %c0_1] : memref<96x32xf32, #tpu.memory_space<vmem>>, vector<1x32xf32>
    %c40 = arith.constant 40 : index
    %c0_2 = arith.constant 0 : index
    %2 = vector.load %arg5[%c40, %c0_2] : memref<96x32xf32, #tpu.memory_space<vmem>>, vector<32x24xf32>
    %c72 = arith.constant 72 : index
    %c0_3 = arith.constant 0 : index
    %3 = vector.load %arg5[%c72, %c0_3] : memref<96x32xf32, #tpu.memory_space<vmem>>, vector<8x16xf32>
    %c80 = arith.constant 80 : index
    %c0_4 = arith.constant 0 : index
    %4 = vector.load %arg5[%c80, %c0_4] : memref<96x32xf32, #tpu.memory_space<vmem>>, vector<8x8xf32>
    %c88 = arith.constant 88 : index
    %c0_5 = arith.constant 0 : index
    %5 = vector.load %arg5[%c88, %c0_5] : memref<96x32xf32, #tpu.memory_space<vmem>>, vector<8x24xf32>
    %c0_6 = arith.constant 0 : index
    %c0_7 = arith.constant 0 : index
    %6 = vector.load %arg1[%c0_6, %c0_7] : memref<2x32xf32, #tpu.memory_space<vmem>>, vector<2x32xf32>
    %cst = arith.constant dense<0.000000e+00> : vector<2x32xf32>
    %7 = tpu.matmul %6, %0, %cst {dimension_numbers = #tpu.dot_dimension_numbers<[1], [0], [0], [1], [0, 0, 1, 1], [], []>} : vector<2x32xf32>, vector<32x32xf32>, vector<2x32xf32> -> vector<2x32xf32>
    %8 = vector.broadcast %1 : vector<1x32xf32> to vector<2x32xf32>
    %9 = arith.addf %7, %8 : vector<2x32xf32>
    %10 = math.tanh %9 : vector<2x32xf32>
    %c0_8 = arith.constant 0 : index
    %c0_9 = arith.constant 0 : index
    %c0_10 = arith.constant 0 : index
    %11 = vector.load %arg2[%c0_8, %c0_9, %c0_10] : memref<2x16x32xf32, #tpu.memory_space<vmem>>, vector<2x16x32xf32>
    %12 = vector.shape_cast %10 : vector<2x32xf32> to vector<2x1x32xf32>
    %13 = vector.broadcast %12 : vector<2x1x32xf32> to vector<2x16x32xf32>
    %14 = arith.mulf %11, %13 : vector<2x16x32xf32>
    %cst_11 = arith.constant dense<0.000000e+00> : vector<2x16xf32>
    %15 = vector.multi_reduction <add>, %14, %cst_11 [2] : vector<2x16x32xf32> to vector<2x16xf32>
    %16 = arith.mulf %10, %10 : vector<2x32xf32>
    %cst_12 = arith.constant dense<0.000000e+00> : vector<2xf32>
    %17 = vector.multi_reduction <add>, %16, %cst_12 [1] : vector<2x32xf32> to vector<2xf32>
    %18 = vector.shape_cast %17 : vector<2xf32> to vector<2x1xf32>
    %19 = math.sqrt %18 : vector<2x1xf32>
    %20 = vector.broadcast %19 : vector<2x1xf32> to vector<2x16xf32>
    %21 = arith.divf %15, %20 : vector<2x16xf32>
    %c0_13 = arith.constant 0 : index
    %c0_14 = arith.constant 0 : index
    %22 = vector.load %arg3[%c0_13, %c0_14] : memref<2x16xf32, #tpu.memory_space<vmem>>, vector<2x16xf32>
    %cst_15 = arith.constant 0.000000e+00 : f32
    %23 = vector.broadcast %cst_15 : f32 to vector<2x16xf32>
    %24 = arith.cmpf ogt, %22, %23 : vector<2x16xf32>
    %cst_16 = arith.constant 9.99999971E-10 : f32
    %25 = vector.broadcast %cst_16 : f32 to vector<2x16xf32>
    %26 = arith.select %24, %25, %21 : vector<2x16xi1>, vector<2x16xf32>
    %cst_17 = arith.constant dense<0xFF800000> : vector<2xf32>
    %27 = vector.multi_reduction <maximumf>, %26, %cst_17 [1] : vector<2x16xf32> to vector<2xf32>
    %28 = vector.shape_cast %27 : vector<2xf32> to vector<2x1xf32>
    %29 = vector.broadcast %28 : vector<2x1xf32> to vector<2x16xf32>
    %30 = arith.subf %26, %29 : vector<2x16xf32>
    %31 = math.exp %30 : vector<2x16xf32>
    %cst_18 = arith.constant dense<0.000000e+00> : vector<2xf32>
    %32 = vector.multi_reduction <add>, %31, %cst_18 [1] : vector<2x16xf32> to vector<2xf32>
    %33 = vector.shape_cast %32 : vector<2xf32> to vector<2x1xf32>
    %34 = math.log %33 : vector<2x1xf32>
    %35 = vector.broadcast %33 : vector<2x1xf32> to vector<2x16xf32>
    %36 = arith.divf %31, %35 : vector<2x16xf32>
    %37 = vector.broadcast %28 : vector<2x1xf32> to vector<2x16xf32>
    %38 = arith.subf %26, %37 : vector<2x16xf32>
    %39 = vector.broadcast %34 : vector<2x1xf32> to vector<2x16xf32>
    %40 = arith.subf %38, %39 : vector<2x16xf32>
    %41 = arith.mulf %36, %40 : vector<2x16xf32>
    %cst_19 = arith.constant dense<0.000000e+00> : vector<2xf32>
    %42 = vector.multi_reduction <add>, %41, %cst_19 [1] : vector<2x16xf32> to vector<2xf32>
    %43 = vector.shape_cast %42 : vector<2xf32> to vector<2x1xf32>
    %cst_20 = arith.constant 0.000000e+00 : f32
    %44 = vector.broadcast %cst_20 : f32 to vector<2x1xf32>
    %45 = arith.subf %44, %43 : vector<2x1xf32>
    %46 = tpu.iota {dimensions = array<i32: 1>} : vector<2x16xi32>
    %47 = arith.sitofp %46 : vector<2x16xi32> to vector<2x16xf32>
    %cst_21 = arith.constant dense<0xFF800000> : vector<2xf32>
    %48 = vector.multi_reduction <maximumf>, %26, %cst_21 [1] : vector<2x16xf32> to vector<2xf32>
    %49 = vector.shape_cast %48 : vector<2xf32> to vector<2x1xf32>
    %50 = vector.broadcast %49 : vector<2x1xf32> to vector<2x16xf32>
    %51 = arith.cmpf oeq, %26, %50 : vector<2x16xf32>
    %cst_22 = arith.constant 1.600000e+01 : f32
    %52 = vector.broadcast %cst_22 : f32 to vector<2x16xf32>
    %53 = arith.select %51, %47, %52 : vector<2x16xi1>, vector<2x16xf32>
    %cst_23 = arith.constant dense<0x7F800000> : vector<2xf32>
    %54 = vector.multi_reduction <minimumf>, %53, %cst_23 [1] : vector<2x16xf32> to vector<2xf32>
    %55 = vector.shape_cast %54 : vector<2xf32> to vector<2x1xf32>
    %56 = vector.broadcast %55 : vector<2x1xf32> to vector<2x16xf32>
    %57 = arith.cmpf oeq, %47, %56 : vector<2x16xf32>
    %cst_24 = arith.constant -3.000000e+38 : f32
    %58 = vector.broadcast %cst_24 : f32 to vector<2x16xf32>
    %59 = arith.select %57, %58, %26 : vector<2x16xi1>, vector<2x16xf32>
    %cst_25 = arith.constant dense<0xFF800000> : vector<2xf32>
    %60 = vector.multi_reduction <maximumf>, %59, %cst_25 [1] : vector<2x16xf32> to vector<2xf32>
    %61 = vector.shape_cast %60 : vector<2xf32> to vector<2x1xf32>
    %62 = vector.broadcast %61 : vector<2x1xf32> to vector<2x16xf32>
    %63 = arith.cmpf oeq, %59, %62 : vector<2x16xf32>
    %cst_26 = arith.constant 1.600000e+01 : f32
    %64 = vector.broadcast %cst_26 : f32 to vector<2x16xf32>
    %65 = arith.select %63, %47, %64 : vector<2x16xi1>, vector<2x16xf32>
    %cst_27 = arith.constant dense<0x7F800000> : vector<2xf32>
    %66 = vector.multi_reduction <minimumf>, %65, %cst_27 [1] : vector<2x16xf32> to vector<2xf32>
    %67 = vector.shape_cast %66 : vector<2xf32> to vector<2x1xf32>
    %68 = vector.broadcast %67 : vector<2x1xf32> to vector<2x16xf32>
    %69 = arith.cmpf oeq, %47, %68 : vector<2x16xf32>
    %cst_28 = arith.constant -3.000000e+38 : f32
    %70 = vector.broadcast %cst_28 : f32 to vector<2x16xf32>
    %71 = arith.select %69, %70, %59 : vector<2x16xi1>, vector<2x16xf32>
    %cst_29 = arith.constant dense<0xFF800000> : vector<2xf32>
    %72 = vector.multi_reduction <maximumf>, %71, %cst_29 [1] : vector<2x16xf32> to vector<2xf32>
    %73 = vector.shape_cast %72 : vector<2xf32> to vector<2x1xf32>
    %74 = vector.broadcast %73 : vector<2x1xf32> to vector<2x16xf32>
    %75 = arith.cmpf oeq, %71, %74 : vector<2x16xf32>
    %cst_30 = arith.constant 1.600000e+01 : f32
    %76 = vector.broadcast %cst_30 : f32 to vector<2x16xf32>
    %77 = arith.select %75, %47, %76 : vector<2x16xi1>, vector<2x16xf32>
    %cst_31 = arith.constant dense<0x7F800000> : vector<2xf32>
    %78 = vector.multi_reduction <minimumf>, %77, %cst_31 [1] : vector<2x16xf32> to vector<2xf32>
    %79 = vector.shape_cast %78 : vector<2xf32> to vector<2x1xf32>
    %80 = vector.broadcast %79 : vector<2x1xf32> to vector<2x16xf32>
    %81 = arith.cmpf oeq, %47, %80 : vector<2x16xf32>
    %cst_32 = arith.constant -3.000000e+38 : f32
    %82 = vector.broadcast %cst_32 : f32 to vector<2x16xf32>
    %83 = arith.select %81, %82, %71 : vector<2x16xi1>, vector<2x16xf32>
    %cst_33 = arith.constant dense<0xFF800000> : vector<2xf32>
    %84 = vector.multi_reduction <maximumf>, %83, %cst_33 [1] : vector<2x16xf32> to vector<2xf32>
    %85 = vector.shape_cast %84 : vector<2xf32> to vector<2x1xf32>
    %86 = vector.broadcast %85 : vector<2x1xf32> to vector<2x16xf32>
    %87 = arith.cmpf oeq, %83, %86 : vector<2x16xf32>
    %cst_34 = arith.constant 1.600000e+01 : f32
    %88 = vector.broadcast %cst_34 : f32 to vector<2x16xf32>
    %89 = arith.select %87, %47, %88 : vector<2x16xi1>, vector<2x16xf32>
    %cst_35 = arith.constant dense<0x7F800000> : vector<2xf32>
    %90 = vector.multi_reduction <minimumf>, %89, %cst_35 [1] : vector<2x16xf32> to vector<2xf32>
    %91 = vector.shape_cast %90 : vector<2xf32> to vector<2x1xf32>
    %92 = vector.broadcast %91 : vector<2x1xf32> to vector<2x16xf32>
    %93 = arith.cmpf oeq, %47, %92 : vector<2x16xf32>
    %cst_36 = arith.constant -3.000000e+38 : f32
    %94 = vector.broadcast %cst_36 : f32 to vector<2x16xf32>
    %95 = arith.select %93, %94, %83 : vector<2x16xi1>, vector<2x16xf32>
    %cst_37 = arith.constant dense<0xFF800000> : vector<2xf32>
    %96 = vector.multi_reduction <maximumf>, %95, %cst_37 [1] : vector<2x16xf32> to vector<2xf32>
    %97 = vector.shape_cast %96 : vector<2xf32> to vector<2x1xf32>
    %98 = vector.broadcast %97 : vector<2x1xf32> to vector<2x16xf32>
    %99 = arith.cmpf oeq, %95, %98 : vector<2x16xf32>
    %cst_38 = arith.constant 1.600000e+01 : f32
    %100 = vector.broadcast %cst_38 : f32 to vector<2x16xf32>
    %101 = arith.select %99, %47, %100 : vector<2x16xi1>, vector<2x16xf32>
    %cst_39 = arith.constant dense<0x7F800000> : vector<2xf32>
    %102 = vector.multi_reduction <minimumf>, %101, %cst_39 [1] : vector<2x16xf32> to vector<2xf32>
    %103 = vector.shape_cast %102 : vector<2xf32> to vector<2x1xf32>
    %104 = vector.broadcast %103 : vector<2x1xf32> to vector<2x16xf32>
    %105 = arith.cmpf oeq, %47, %104 : vector<2x16xf32>
    %cst_40 = arith.constant -3.000000e+38 : f32
    %106 = vector.broadcast %cst_40 : f32 to vector<2x16xf32>
    %107 = arith.select %105, %106, %95 : vector<2x16xi1>, vector<2x16xf32>
    %cst_41 = arith.constant dense<0xFF800000> : vector<2xf32>
    %108 = vector.multi_reduction <maximumf>, %107, %cst_41 [1] : vector<2x16xf32> to vector<2xf32>
    %109 = vector.shape_cast %108 : vector<2xf32> to vector<2x1xf32>
    %110 = vector.broadcast %109 : vector<2x1xf32> to vector<2x16xf32>
    %111 = arith.cmpf oeq, %107, %110 : vector<2x16xf32>
    %cst_42 = arith.constant 1.600000e+01 : f32
    %112 = vector.broadcast %cst_42 : f32 to vector<2x16xf32>
    %113 = arith.select %111, %47, %112 : vector<2x16xi1>, vector<2x16xf32>
    %cst_43 = arith.constant dense<0x7F800000> : vector<2xf32>
    %114 = vector.multi_reduction <minimumf>, %113, %cst_43 [1] : vector<2x16xf32> to vector<2xf32>
    %115 = vector.shape_cast %114 : vector<2xf32> to vector<2x1xf32>
    %116 = vector.broadcast %115 : vector<2x1xf32> to vector<2x16xf32>
    %117 = arith.cmpf oeq, %47, %116 : vector<2x16xf32>
    %cst_44 = arith.constant -3.000000e+38 : f32
    %118 = vector.broadcast %cst_44 : f32 to vector<2x16xf32>
    %119 = arith.select %117, %118, %107 : vector<2x16xi1>, vector<2x16xf32>
    %cst_45 = arith.constant dense<0xFF800000> : vector<2xf32>
    %120 = vector.multi_reduction <maximumf>, %119, %cst_45 [1] : vector<2x16xf32> to vector<2xf32>
    %121 = vector.shape_cast %120 : vector<2xf32> to vector<2x1xf32>
    %122 = vector.broadcast %121 : vector<2x1xf32> to vector<2x16xf32>
    %123 = arith.cmpf oeq, %119, %122 : vector<2x16xf32>
    %cst_46 = arith.constant 1.600000e+01 : f32
    %124 = vector.broadcast %cst_46 : f32 to vector<2x16xf32>
    %125 = arith.select %123, %47, %124 : vector<2x16xi1>, vector<2x16xf32>
    %cst_47 = arith.constant dense<0x7F800000> : vector<2xf32>
    %126 = vector.multi_reduction <minimumf>, %125, %cst_47 [1] : vector<2x16xf32> to vector<2xf32>
    %127 = vector.shape_cast %126 : vector<2xf32> to vector<2x1xf32>
    %128 = vector.broadcast %127 : vector<2x1xf32> to vector<2x16xf32>
    %129 = arith.cmpf oeq, %47, %128 : vector<2x16xf32>
    %cst_48 = arith.constant -3.000000e+38 : f32
    %130 = vector.broadcast %cst_48 : f32 to vector<2x16xf32>
    %131 = arith.select %129, %130, %119 : vector<2x16xi1>, vector<2x16xf32>
    %cst_49 = arith.constant dense<0xFF800000> : vector<2xf32>
    %132 = vector.multi_reduction <maximumf>, %131, %cst_49 [1] : vector<2x16xf32> to vector<2xf32>
    %133 = vector.shape_cast %132 : vector<2xf32> to vector<2x1xf32>
    %134 = vector.broadcast %133 : vector<2x1xf32> to vector<2x16xf32>
    %135 = arith.cmpf oeq, %131, %134 : vector<2x16xf32>
    %cst_50 = arith.constant 1.600000e+01 : f32
    %136 = vector.broadcast %cst_50 : f32 to vector<2x16xf32>
    %137 = arith.select %135, %47, %136 : vector<2x16xi1>, vector<2x16xf32>
    %cst_51 = arith.constant dense<0x7F800000> : vector<2xf32>
    %138 = vector.multi_reduction <minimumf>, %137, %cst_51 [1] : vector<2x16xf32> to vector<2xf32>
    %139 = vector.shape_cast %138 : vector<2xf32> to vector<2x1xf32>
    %140 = tpu.concatenate %55, %67, %79, %91, %103, %115, %127, %139 in 1 : vector<2x1xf32>, vector<2x1xf32>, vector<2x1xf32>, vector<2x1xf32>, vector<2x1xf32>, vector<2x1xf32>, vector<2x1xf32>, vector<2x1xf32> -> vector<2x8xf32>
    %141 = tpu.concatenate %49, %61, %73, %85, %97, %109, %121, %133 in 1 : vector<2x1xf32>, vector<2x1xf32>, vector<2x1xf32>, vector<2x1xf32>, vector<2x1xf32>, vector<2x1xf32>, vector<2x1xf32>, vector<2x1xf32> -> vector<2x8xf32>
    %cst_52 = arith.constant dense<0.000000e+00> : vector<2xf32>
    %142 = vector.multi_reduction <add>, %141, %cst_52 [1] : vector<2x8xf32> to vector<2xf32>
    %143 = vector.shape_cast %142 : vector<2xf32> to vector<2x1xf32>
    %cst_53 = arith.constant 8.000000e+00 : f32
    %144 = vector.broadcast %cst_53 : f32 to vector<2x1xf32>
    %145 = arith.divf %143, %144 : vector<2x1xf32>
    %146 = arith.subf %145, %28 : vector<2x1xf32>
    %147 = arith.subf %146, %34 : vector<2x1xf32>
    %148 = tpu.iota {dimensions = array<i32: 2>} : vector<2x8x16xi32>
    %149 = arith.sitofp %148 : vector<2x8x16xi32> to vector<2x8x16xf32>
    %150 = vector.shape_cast %140 : vector<2x8xf32> to vector<2x8x1xf32>
    %151 = vector.broadcast %150 : vector<2x8x1xf32> to vector<2x8x16xf32>
    %152 = arith.cmpf oeq, %151, %149 : vector<2x8x16xf32>
    %153 = arith.extui %152 : vector<2x8x16xi1> to vector<2x8x16xi32>
    %154 = arith.sitofp %153 : vector<2x8x16xi32> to vector<2x8x16xf32>
    %155 = math.tanh %141 : vector<2x8xf32>
    %156 = vector.shape_cast %155 : vector<2x8xf32> to vector<2x8x1xf32>
    %157 = vector.broadcast %156 : vector<2x8x1xf32> to vector<2x8x16xf32>
    %158 = arith.mulf %154, %157 : vector<2x8x16xf32>
    "tpu.trace_start"() <{level = 10 : i32, message = "bkn,bnd->bkd"}> : () -> ()
    %cst_54 = arith.constant dense<0.000000e+00> : vector<2x8x32xf32>
    %159 = tpu.matmul %158, %11, %cst_54 {dimension_numbers = #tpu.dot_dimension_numbers<[2], [1], [1], [2], [0, 0, 0, 1, 1, 2], [0], [0]>} : vector<2x8x16xf32>, vector<2x16x32xf32>, vector<2x8x32xf32> -> vector<2x8x32xf32>
    "tpu.trace_stop"() : () -> ()
    %160 = vector.shape_cast %159 : vector<2x8x32xf32> to vector<16x32xf32>
    %c0_55 = arith.constant 0 : index
    %c0_56 = arith.constant 0 : index
    %161 = vector.load %arg4[%c0_55, %c0_56] : memref<16x8xf32, #tpu.memory_space<vmem>>, vector<16x8xf32>
    %cst_57 = arith.constant dense<0.000000e+00> : vector<16x24xf32>
    %162 = tpu.matmul %160, %2, %cst_57 {dimension_numbers = #tpu.dot_dimension_numbers<[1], [0], [0], [1], [0, 0, 1, 1], [], []>} : vector<16x32xf32>, vector<32x24xf32>, vector<16x24xf32> -> vector<16x24xf32>
    %163 = tpu.concatenate %5, %5 in 0 : vector<8x24xf32>, vector<8x24xf32> -> vector<16x24xf32>
    %164 = arith.addf %162, %163 : vector<16x24xf32>
    %cst_58 = arith.constant dense<0.000000e+00> : vector<16x16xf32>
    %165 = tpu.matmul %161, %3, %cst_58 {dimension_numbers = #tpu.dot_dimension_numbers<[1], [0], [0], [1], [0, 0, 1, 1], [], []>} : vector<16x8xf32>, vector<8x16xf32>, vector<16x16xf32> -> vector<16x16xf32>
    %166 = vector.extract_strided_slice %164 {offsets = [0, 0], sizes = [16, 8], strides = [1, 1]} : vector<16x24xf32> to vector<16x8xf32>
    %167 = vector.extract_strided_slice %165 {offsets = [0, 0], sizes = [16, 8], strides = [1, 1]} : vector<16x16xf32> to vector<16x8xf32>
    %168 = arith.addf %166, %167 : vector<16x8xf32>
    %169 = arith.negf %168 : vector<16x8xf32>
    %170 = math.exp %169 : vector<16x8xf32>
    %cst_59 = arith.constant 1.000000e+00 : f32
    %171 = vector.broadcast %cst_59 : f32 to vector<16x8xf32>
    %172 = arith.addf %171, %170 : vector<16x8xf32>
    %173 = arith.divf %171, %172 : vector<16x8xf32>
    %174 = vector.extract_strided_slice %164 {offsets = [0, 8], sizes = [16, 8], strides = [1, 1]} : vector<16x24xf32> to vector<16x8xf32>
    %175 = vector.extract_strided_slice %165 {offsets = [0, 8], sizes = [16, 8], strides = [1, 1]} : vector<16x16xf32> to vector<16x8xf32>
    %176 = arith.addf %174, %175 : vector<16x8xf32>
    %177 = arith.negf %176 : vector<16x8xf32>
    %178 = math.exp %177 : vector<16x8xf32>
    %cst_60 = arith.constant 1.000000e+00 : f32
    %179 = vector.broadcast %cst_60 : f32 to vector<16x8xf32>
    %180 = arith.addf %179, %178 : vector<16x8xf32>
    %181 = arith.divf %179, %180 : vector<16x8xf32>
    %182 = arith.mulf %181, %161 : vector<16x8xf32>
    %183 = vector.extract_strided_slice %164 {offsets = [0, 16], sizes = [16, 8], strides = [1, 1]} : vector<16x24xf32> to vector<16x8xf32>
    %cst_61 = arith.constant dense<0.000000e+00> : vector<16x8xf32>
    %184 = tpu.matmul %182, %4, %cst_61 {dimension_numbers = #tpu.dot_dimension_numbers<[1], [0], [0], [1], [0, 0, 1, 1], [], []>} : vector<16x8xf32>, vector<8x8xf32>, vector<16x8xf32> -> vector<16x8xf32>
    %185 = arith.addf %183, %184 : vector<16x8xf32>
    %186 = math.tanh %185 : vector<16x8xf32>
    %cst_62 = arith.constant 1.000000e+00 : f32
    %187 = vector.broadcast %cst_62 : f32 to vector<16x8xf32>
    %188 = arith.subf %187, %173 : vector<16x8xf32>
    %189 = arith.mulf %188, %161 : vector<16x8xf32>
    %190 = arith.mulf %173, %186 : vector<16x8xf32>
    %191 = arith.addf %189, %190 : vector<16x8xf32>
    %c0_63 = arith.constant 0 : index
    %c0_64 = arith.constant 0 : index
    %192 = vector.load %arg7[%c0_63, %c0_64] : memref<16x8xf32, #tpu.memory_space<vmem>>, vector<16x8xf32>
    tpu.vector_store %arg7[%c0_63, %c0_64], %191 {strides = array<i32>} : memref<16x8xf32, #tpu.memory_space<vmem>>, vector<16x8xf32>,
    %cst_65 = arith.constant 0.000000e+00 : f32
    %193 = vector.broadcast %cst_65 : f32 to vector<2x128xf32>
    %c0_66 = arith.constant 0 : index
    %c0_67 = arith.constant 0 : index
    %194 = vector.load %arg6[%c0_66, %c0_67] : memref<2x128xf32, #tpu.memory_space<vmem>>, vector<2x128xf32>
    tpu.vector_store %arg6[%c0_66, %c0_67], %193 {strides = array<i32>} : memref<2x128xf32, #tpu.memory_space<vmem>>, vector<2x128xf32>,
    %c0_68 = arith.constant 0 : index
    %c0_69 = arith.constant 0 : index
    %195 = vector.load %arg6[%c0_68, %c0_69] : memref<2x128xf32, #tpu.memory_space<vmem>>, vector<2x32xf32>
    tpu.vector_store %arg6[%c0_68, %c0_69], %10 {strides = array<i32>} : memref<2x128xf32, #tpu.memory_space<vmem>>, vector<2x32xf32>,
    %c0_70 = arith.constant 0 : index
    %c32_71 = arith.constant 32 : index
    %196 = vector.load %arg6[%c0_70, %c32_71] : memref<2x128xf32, #tpu.memory_space<vmem>>, vector<2x1xf32>
    tpu.vector_store %arg6[%c0_70, %c32_71], %45 {strides = array<i32>} : memref<2x128xf32, #tpu.memory_space<vmem>>, vector<2x1xf32>,
    %c0_72 = arith.constant 0 : index
    %c33 = arith.constant 33 : index
    %197 = vector.load %arg6[%c0_72, %c33] : memref<2x128xf32, #tpu.memory_space<vmem>>, vector<2x1xf32>
    tpu.vector_store %arg6[%c0_72, %c33], %147 {strides = array<i32>} : memref<2x128xf32, #tpu.memory_space<vmem>>, vector<2x1xf32>,
    %c0_73 = arith.constant 0 : index
    %c34 = arith.constant 34 : index
    %198 = vector.load %arg6[%c0_73, %c34] : memref<2x128xf32, #tpu.memory_space<vmem>>, vector<2x8xf32>
    tpu.vector_store %arg6[%c0_73, %c34], %140 {strides = array<i32>} : memref<2x128xf32, #tpu.memory_space<vmem>>, vector<2x8xf32>,
    return
  }
  func.func @transform_0(%arg0: i32) -> (i32, i32) {
    %c0_i32 = arith.constant 0 : i32
    %c0_i32_0 = arith.constant 0 : i32
    %c0_i32_1 = arith.constant 0 : i32
    return %c0_i32, %c0_i32_0 : i32, i32
  }
  func.func @transform_1(%arg0: i32) -> (i32, i32, i32) {
    %c0_i32 = arith.constant 0 : i32
    %c0_i32_0 = arith.constant 0 : i32
    %c0_i32_1 = arith.constant 0 : i32
    %c0_i32_2 = arith.constant 0 : i32
    return %c0_i32, %c0_i32_0, %c0_i32_1 : i32, i32, i32
  }
  func.func @transform_2(%arg0: i32) -> (i32, i32) {
    %c0_i32 = arith.constant 0 : i32
    %c0_i32_0 = arith.constant 0 : i32
    %c0_i32_1 = arith.constant 0 : i32
    return %c0_i32, %c0_i32_0 : i32, i32
  }
  func.func @transform_3(%arg0: i32) -> (i32, i32) {
    %c0_i32 = arith.constant 0 : i32
    %c0_i32_0 = arith.constant 0 : i32
    %c0_i32_1 = arith.constant 0 : i32
    return %c0_i32, %c0_i32_0 : i32, i32
  }
  func.func @transform_4(%arg0: i32) -> (i32, i32) {
    %c0_i32 = arith.constant 0 : i32
    %c0_i32_0 = arith.constant 0 : i32
    %c0_i32_1 = arith.constant 0 : i32
    return %c0_i32, %c0_i32_0 : i32, i32
  }
  func.func @transform_5(%arg0: i32) -> (i32, i32) {
    %c0_i32 = arith.constant 0 : i32
    %c0_i32_0 = arith.constant 0 : i32
    %c0_i32_1 = arith.constant 0 : i32
    return %c0_i32, %c0_i32_0 : i32, i32
  }
  func.func @transform_6(%arg0: i32) -> (i32, i32) {
    %c0_i32 = arith.constant 0 : i32
    %c0_i32_0 = arith.constant 0 : i32
    %c0_i32_1 = arith.constant 0 : i32
    return %c0_i32, %c0_i32_0 : i32, i32
  }
}

</mosaic_0001>

<bundles_post_ra>
// kernel: _lambda_.1
= control target key start
LH: loop header
LB: loop body
LE: loop exit
PB: predicated region body
PF: predicated region fallthrough
CT: control target
= control target key end

     0   :  { %v1014_v0 = vmov 0.0|0.0   ;;  %vm1015_vm0 = vmmov 0   ;;  %v1016_v4 = vmov 0.0   ;;  %vm39_vm1 = vcmask 261120   ;;  %s1019_s10 = smov 8   ;;  %s1021_s13 = smov 16   ;;  %s1310_s4 = inlined_call_operand.vmem [shape: f32[96,32], index: 4, kind: input, shape index: {}]   ;;  %s1311_s0 = inlined_call_operand.vmem [shape: f32[2,32], index: 0, kind: input, shape index: {}]   ;;  %s1312_s5 = inlined_call_operand.vmem [shape: f32[2,128], index: 5, kind: output, shape index: {0}]   ;;  %s1313_s1 = inlined_call_operand.vmem [shape: f32[2,16,32], index: 1, kind: input, shape index: {}]   ;;  %s1314_s2 = inlined_call_operand.vmem [shape: f32[2,16], index: 2, kind: input, shape index: {}]   ;;  %s1315_s3 = inlined_call_operand.vmem [shape: f32[16,8], index: 3, kind: input, shape index: {}]   ;;  %s1316_s6 = inlined_call_operand.vmem [shape: f32[16,8], index: 6, kind: output, shape index: {1}]  }
   0x1   :  { %954 = vmatprep.subr.bf16.mxu0 %v1014_v0  ;;  %v22_v1 = vld [vmem:[%s1310_s4] sm:$0xff]  ;;  %v23_v2 = vld [vmem:[%s1310_s4 + $0x8] sm:$0xff]  ;;  %v24_v3 = vld [vmem:[%s1310_s4 + $0x10] sm:$0xff]  ;;  %916 = vmatprep.mubr.msk.f32.mxu0 %vm1015_vm0, %v1016_v4  ;;  %851 = vst [vmem:[%s1312_s5] sm:$0x3] %v1016_v4  ;;  %v1017_v13 = vmov 1966171168   ;;  %v122_v15 = vlaneseq }
   0x2   :  { %v955_v5 = vpack.c.bf16 %v23_v2, %v22_v1  ;;  %v25_v6 = vld [vmem:[%s1310_s4 + $0x18] sm:$0xff]  ;;  %960 = vmatprep.subr.bf16.mxu1 %v1014_v0  ;;  %923 = vmatprep.mubr.msk.f32.mxu1 %vm1015_vm0, %v1016_v4  ;;  %v34_v8 = vld [vmem:[%s1311_s0] sm:$0x3]  ;;  %v120_v14 = vunpack.c.l.s4 %v1017_v13  ;;  %vm168_vm2 = vcmask 254976   ;;  %v1102_v26 = vld [vmem:[%s1313_s1 + $0x8] sm:$0xff]  ;;  %v1018_v41 = vmov 0  }
   0x3   :  { %v958_v7 = vpack.c.bf16 %v25_v6, %v24_v3  ;;  %v871_v9 = vld [vmem:[%s1310_s4 + $0x20] ss:$0 sm:$0xff]  ;;  %v1090_v17 = vshrl.u32 %v122_v15, 7  ;;  %v1113_v30 = vld [vmem:[%s1313_s1 + $0x18] sm:$0xff]  ;;  %v1118_v31 = vld [vmem:[%s1313_s1 + $0x10] sm:$0xff]  ;;  %985 = vset.pattern.permute.xlu0 %v1018_v41  ;;  %984 = vset.pattern.permute.xlu1 %v1018_v41  ;;  %v215_v61 = vand.u32 127, %v122_v15 }
   0x4   :  { %956 = vmatpush3.bf16.msra.mxu0 %v955_v5  ;;  %v121_v16 = vunpack.c.0.s8 %v120_v14  ;;  %v1107_v27 = vld [vmem:[%s1313_s1] sm:$0xff]  ;;  %vm225_vm5 = vcmask 130112   ;;  %vm236_vm6 = vcmask 1041409   ;;  %vm240_vm8 = vcmask 123904   ;;  %s1022_s16 = smov 112   ;;  %s1023_s17 = smov 34  }
   0x5   :  { %957 = vmatprep.subr.bf16.mxu0 %v1014_v0  ;;  %v1097_v22 = vsub.s32 0, %v1090_v17  ;;  %v1130_v45 = vsub.s32 1, %v1090_v17  ;;  %v220_v62 = vadd.s32 4294967288, %v215_v61  ;;  %v218_v2 = vsub.s32 %v215_v61, %v1090_v17 }
   0x6   :  { %v124_v18 = vsub.s32 %v121_v16, %v1090_v17 }
   0x7   :  { %v223_v1 = vsub.s32 %v220_v62, %v1090_v17  ;;  %v1144_v17 = vcvt.s32.f32 %v215_v61 }
   0x8   :  { %959 = vmatpush3.bf16.msra.mxu0 %v958_v7 }
   0xb   :  { %917 = vmatmul.mubr.msk.f32.vlgmr.msra.gmra.mrb[0].mxu0 %vm39_vm1, %v34_v8  ;;  %v196_v8 = vld [vmem:[%s1314_s2] sm:$0x3] }
   0xc   :  { %vm197_vm7 = vcmp.gt.f32.partialorder %v196_v8, 0.0 }
  0xde   :  { %v109_v10 = vpop.f32.mrb[0].mxu0 }
  0xdf   :  { %v110_v11 = vadd.f32 %v871_v9, %v109_v10  ;;  %v918_v12 = vpop.f32.mrb[1].mxu0 }
  0xe1   :  { %986 = vtanh.f32 %v110_v11 }
  0xeb   :  { %v987_v19 = vpop.eup %986 }
  0xec   :  { %v167_v20 = vmul.f32 %v987_v19, %v987_v19  ;;  %852 = vst.msk [vmem:[%s1312_s5] sm:$0x3] %vm168_vm2, %v987_v19  ;;  %v125_v21 = vrot.slane %v987_v19, %v124_v18 }
  0xee   :  { %v169_v23 = vsel %vm168_vm2, %v167_v20, 0.0  ;;  %v133_v24 = vrot.slane %v125_v21, %v124_v18  ;;  %v126_v25 = vcombine.high %v125_v21, %v125_v21 }
  0xef   :  { %170 = vadd.xlane.f32.xlu0 %v169_v23 }
  0xf0   :  { %v144_v28 = vrot.slane %v133_v24, %v1097_v22  ;;  %v140_v29 = vrot.slane %v126_v25, %v124_v18 }
  0xf2   :  { %v152_v32 = vmul.f32 %v144_v28, %v1102_v26  ;;  %v151_v33 = vmul.f32 %v144_v28, %v1107_v27  ;;  %v148_v34 = vrot.slane %v140_v29, %v1097_v22 }
  0xf4   :  { %v158_v35 = vsel %vm39_vm1, %v152_v32, 0.0  ;;  %v155_v36 = vsel %vm39_vm1, %v151_v33, 0.0  ;;  %v154_v37 = vmul.f32 %v148_v34, %v1113_v30  ;;  %v153_v38 = vmul.f32 %v148_v34, %v1118_v31 }
  0xf5   :  { %159 = vadd.xlane.f32.xlu1 %v158_v35  ;;  %156 = vadd.xlane.f32.xlu0 %v155_v36 }
  0xf6   :  { %v164_v39 = vsel %vm39_vm1, %v154_v37, 0.0  ;;  %v161_v40 = vsel %vm39_vm1, %v153_v38, 0.0 }
  0xf9   :  { %165 = vadd.xlane.f32.xlu0 %v164_v39  ;;  %162 = vadd.xlane.f32.xlu1 %v161_v40 }
 0x17c   :  { %v171_v42 = vpop.xlane.xlu0 %170 }
 0x17d   :  { %988 = vrsqrt.f32 %v171_v42  ;;  %vm174_vm3 = vcmp.eq.f32.partialorder %v171_v42, inf  ;;  %v177_v46 = vand.u32 2147483648, %v171_v42  ;;  %vm176_vm4 = vcmp.eq.f32.partialorder %v171_v42, 0.0 }
 0x182   :  { %v160_v51 = vpop.xlane.xlu1 %159  ;;  %v157_v53 = vpop.xlane.xlu0 %156 }
 0x186   :  { %v163_v57 = vpop.xlane.xlu1 %162  ;;  %v166_v59 = vpop.xlane.xlu0 %165 }
 0x187   :  { %v989_v43 = vpop.eup %988 }
 0x188   :  { %v173_v44 = vmul.f32 %v989_v43, %v171_v42 }
 0x18a   :  { %v175_v47 = vsel %vm174_vm3, %v171_v42, %v173_v44 }
 0x18b   :  { %v178_v48 = vsel %vm176_vm4, %v177_v46, %v175_v47 }
 0x18c   :  { %v183_v49 = vrot.slane %v178_v48, %v1097_v22  ;;  %v187_v50 = vrot.slane %v178_v48, %v1130_v45 }
 0x18e   :  { %990 = vrcp.f32 %v183_v49 }
 0x18f   :  { %992 = vrcp.f32 %v187_v50 }
 0x198   :  { %v991_v52 = vpop.eup %990 }
 0x199   :  { %v192_v54 = vmul.f32 %v991_v52, %v160_v51  ;;  %v191_v55 = vmul.f32 %v991_v52, %v157_v53  ;;  %v993_v56 = vpop.eup %992 }
 0x19a   :  { %v194_v58 = vmul.f32 %v993_v56, %v163_v57  ;;  %v195_v60 = vmul.f32 %v993_v56, %v166_v59 }
 0x19b   :  { %206 = vperm.xlu0 %985, %v192_v54   ;;  %203 = vperm.xlu1 %984, %v191_v55  }
 0x19f   :  { %209 = vperm.xlu1 %984, %v194_v58  }
 0x1a3   :  { %212 = vperm.xlu1 %984, %v195_v60  }
 0x21a   :  { %v204_v63 = vpop.permute.xlu1 %203  ;;  %v207_v3 = vpop.permute.xlu0 %206 }
 0x21b   :  { %v224_v6 = vrot.slane %v207_v3, %v223_v1  ;;  %v219_v7 = vrot.slane %v204_v63, %v218_v2 }
 0x21d   :  { %v226_v12 = vsel %vm225_vm5, %v224_v6, %v219_v7 }
 0x21e   :  { %v210_v5 = vpop.permute.xlu1 %209 }
 0x21f   :  { %v230_v10 = vrot.slane %v210_v5, %v218_v2 }
 0x222   :  { %v213_v9 = vpop.permute.xlu1 %212 }
 0x223   :  { %v234_v11 = vrot.slane %v213_v9, %v223_v1 }
 0x225   :  { %v235_v13 = vsel %vm225_vm5, %v234_v11, %v230_v10 }
 0x226   :  { %v237_v14 = vsel %vm236_vm6, %v235_v13, %v226_v12 }
 0x227   :  { %v1140_v15 = vsel %vm197_vm7, 1e-09, %v237_v14 }
 0x228   :  { %v241_v16 = vsel %vm240_vm8, %v1140_v15, -inf }
 0x229   :  { %242 = vmax.xlane.f32.xlu1 %v241_v16 }
 0x2b6   :  { %v1146_v18 = vpop.xlane.xlu1 %242 }
 0x2b7   :  { %vm261_vm9 = vcmp.eq.f32.partialorder %v1140_v15, %v1146_v18 }
 0x2b8   :  { %v262_v19 = vsel %vm261_vm9, %v1144_v17, 16.0 }
 0x2b9   :  { %v263_v20 = vsel %vm240_vm8, %v262_v19, inf  ;;  %v961_v19 = vpack.c.bf16 %v1102_v26, %v1107_v27 }
 0x2ba   :  { %264 = vmin.xlane.f32.xlu0 %v263_v20 }
 0x2bb   :  { %962 = vmatpush3.bf16.msra.mxu1 %v961_v19 }
 0x2bc   :  { %963 = vmatprep.subr.bf16.mxu1 %v1014_v0  ;;  %v27_v0 = vld [vmem:[%s1310_s4 + $0x28] sm:$0xff] }
 0x347   :  { %v1152_v21 = vpop.xlane.xlu0 %264 }
 0x348   :  { %vm266_vm10 = vcmp.eq.f32.partialorder %v1144_v17, %v1152_v21 }
 0x349   :  { %v267_v23 = vsel %vm266_vm10, -3e+38, %v1140_v15  ;;  %vm336_vm10 = vcmask 7168  }
 0x34a   :  { %v268_v24 = vsel %vm240_vm8, %v267_v23, -inf }
 0x34b   :  { %269 = vmax.xlane.f32.xlu1 %v268_v24 }
 0x3d8   :  { %v1158_v25 = vpop.xlane.xlu1 %269 }
 0x3d9   :  { %vm271_vm11 = vcmp.eq.f32.partialorder %v267_v23, %v1158_v25  ;;  %v350_v5 = vsel %vm336_vm10, %v1146_v18, %v1158_v25 }
 0x3da   :  { %v272_v28 = vsel %vm271_vm11, %v1144_v17, 16.0  ;;  %vm338_vm11 = vcmask 15360  }
 0x3db   :  { %v273_v29 = vsel %vm240_vm8, %v272_v28, inf }
 0x3dc   :  { %274 = vmin.xlane.f32.xlu1 %v273_v29 }
 0x469   :  { %v1163_v32 = vpop.xlane.xlu1 %274 }
 0x46a   :  { %vm276_vm12 = vcmp.eq.f32.partialorder %v1144_v17, %v1163_v32  ;;  %v337_v20 = vsel %vm336_vm10, %v1152_v21, %v1163_v32  ;;  %v28_v21 = vld [vmem:[%s1310_s4 + $0x30] sm:$0xff] }
 0x46b   :  { %v277_v33 = vsel %vm276_vm12, -3e+38, %v267_v23  ;;  %vm340_vm12 = vcmask 23552  }
 0x46c   :  { %v278_v34 = vsel %vm240_vm8, %v277_v33, -inf }
 0x46d   :  { %279 = vmax.xlane.f32.xlu1 %v278_v34 }
 0x4fa   :  { %v280_v35 = vpop.xlane.xlu1 %279 }
 0x4fb   :  { %vm281_vm13 = vcmp.eq.f32.partialorder %v277_v33, %v280_v35  ;;  %v351_v7 = vsel %vm338_vm11, %v350_v5, %v280_v35 }
 0x4fc   :  { %v282_v36 = vsel %vm281_vm13, %v1144_v17, 16.0 }
 0x4fd   :  { %v283_v37 = vsel %vm240_vm8, %v282_v36, inf }
 0x4fe   :  { %284 = vmin.xlane.f32.xlu1 %v283_v37  ;;  %v964_v37 = vpack.c.bf16 %v1113_v30, %v1118_v31  ;;  %v29_v30 = vld [vmem:[%s1310_s4 + $0x38] sm:$0xff]  ;;  %v30_v31 = vld [vmem:[%s1310_s4 + $0x40] sm:$0xff] }
 0x58b   :  { %v1170_v38 = vpop.xlane.xlu1 %284 }
 0x58c   :  { %vm286_vm14 = vcmp.eq.f32.partialorder %v1144_v17, %v1170_v38  ;;  %v339_v23 = vsel %vm338_vm11, %v337_v20, %v1170_v38 }
 0x58d   :  { %v287_v39 = vsel %vm286_vm14, -3e+38, %v277_v33  ;;  %vm342_vm14 = vcmask 31744   ;;  %v966_v33 = vpack.c.bf16 %v28_v21, %v27_v0 }
 0x58e   :  { %v288_v40 = vsel %vm240_vm8, %v287_v39, -inf }
 0x58f   :  { %289 = vmax.xlane.f32.xlu1 %v288_v40  ;;  %967 = vmatprep.subr.bf16.mxu0 %v966_v33 }
 0x590   :  { %969 = vmatpush3.bf16.msra.mxu0 %v966_v33 }
 0x61c   :  { %v290_v41 = vpop.xlane.xlu1 %289 }
 0x61d   :  { %vm291_vm15 = vcmp.eq.f32.partialorder %v287_v39, %v290_v41  ;;  %v352_v9 = vsel %vm340_vm12, %v351_v7, %v290_v41 }
 0x61e   :  { %v292_v42 = vsel %vm291_vm15, %v1144_v17, 16.0  ;;  %vm344_vm15 = vcmask 39936  }
 0x61f   :  { %v293_v43 = vsel %vm240_vm8, %v292_v42, inf }
 0x620   :  { %294 = vmin.xlane.f32.xlu0 %v293_v43  ;;  %v970_v43 = vpack.c.bf16 %v30_v31, %v29_v30 }
 0x622   :  { %971 = vmatprep.subr.bf16.mxu0 %v970_v43 }
 0x623   :  { %973 = vmatpush3.bf16.msra.mxu0 %v970_v43 }
 0x6ad   :  { %v1177_v44 = vpop.xlane.xlu0 %294 }
 0x6ae   :  { %vm296_vm2 = vcmp.eq.f32.partialorder %v1144_v17, %v1177_v44  ;;  %v341_v24 = vsel %vm340_vm12, %v339_v23, %v1177_v44  ;;  %v1261_v44 = vld [vmem:[%s1315_s3 + $0x8] sm:$0xff] }
 0x6af   :  { %v297_v46 = vsel %vm296_vm2, -3e+38, %v287_v39  ;;  %vm346_vm2 = vcmask 48128  }
 0x6b0   :  { %v298_v47 = vsel %vm240_vm8, %v297_v46, -inf }
 0x6b1   :  { %299 = vmax.xlane.f32.xlu1 %v298_v47 }
 0x73e   :  { %v300_v48 = vpop.xlane.xlu1 %299 }
 0x73f   :  { %vm301_vm3 = vcmp.eq.f32.partialorder %v297_v46, %v300_v48  ;;  %v353_v10 = vsel %vm342_vm14, %v352_v9, %v300_v48 }
 0x740   :  { %v302_v49 = vsel %vm301_vm3, %v1144_v17, 16.0  ;;  %vm348_vm3 = vcmask 56320  }
 0x741   :  { %v303_v50 = vsel %vm240_vm8, %v302_v49, inf }
 0x742   :  { %304 = vmin.xlane.f32.xlu0 %v303_v50 }
 0x7cf   :  { %v305_v51 = vpop.xlane.xlu0 %304 }
 0x7d0   :  { %vm306_vm4 = vcmp.eq.f32.partialorder %v1144_v17, %v305_v51  ;;  %v343_v25 = vsel %vm342_vm14, %v341_v24, %v305_v51 }
 0x7d1   :  { %v307_v52 = vsel %vm306_vm4, -3e+38, %v297_v46 }
 0x7d2   :  { %v308_v53 = vsel %vm240_vm8, %v307_v52, -inf }
 0x7d3   :  { %309 = vmax.xlane.f32.xlu1 %v308_v53  ;;  %v33_v53 = vld [vmem:[%s1310_s4 + $0x58] sm:$0xff] }
 0x860   :  { %v310_v54 = vpop.xlane.xlu1 %309 }
 0x861   :  { %vm311_vm5 = vcmp.eq.f32.partialorder %v307_v52, %v310_v54  ;;  %v354_v11 = vsel %vm344_vm15, %v353_v10, %v310_v54  ;;  %v244_v10 = vsub.f32 %v1140_v15, %v1146_v18 }
 0x862   :  { %v312_v55 = vsel %vm311_vm5, %v1144_v17, 16.0  ;;  %vm402_vm5 = vcmask 130048  }
 0x863   :  { %v313_v56 = vsel %vm240_vm8, %v312_v55, inf }
 0x864   :  { %314 = vmin.xlane.f32.xlu0 %v313_v56 }
 0x8f1   :  { %v315_v57 = vpop.xlane.xlu0 %314 }
 0x8f2   :  { %vm316_vm6 = vcmp.eq.f32.partialorder %v1144_v17, %v315_v57  ;;  %v345_v28 = vsel %vm344_vm15, %v343_v25, %v315_v57 }
 0x8f3   :  { %v317_v58 = vsel %vm316_vm6, -3e+38, %v307_v52  ;;  %v32_v52 = vld [vmem:[%s1310_s4 + $0x50] sm:$0xff] }
 0x8f4   :  { %v318_v59 = vsel %vm240_vm8, %v317_v58, -inf }
 0x8f5   :  { %319 = vmax.xlane.f32.xlu1 %v318_v59 }
 0x982   :  { %v320_v60 = vpop.xlane.xlu1 %319 }
 0x983   :  { %vm321_vm7 = vcmp.eq.f32.partialorder %v317_v58, %v320_v60  ;;  %v355_v12 = vsel %vm346_vm2, %v354_v11, %v320_v60  ;;  %v245_v11 = vmul.f32 1.442695, %v244_v10 }
 0x984   :  { %v322_v61 = vsel %vm321_vm7, %v1144_v17, 16.0  ;;  %vm357_vm7 = vcmask 58368  }
 0x985   :  { %v323_v62 = vsel %vm240_vm8, %v322_v61, inf }
 0x986   :  { %324 = vmin.xlane.f32.xlu0 %v323_v62 }
 0xa13   :  { %v325_v63 = vpop.xlane.xlu0 %324 }
 0xa14   :  { %vm326_vm9 = vcmp.eq.f32.partialorder %v1144_v17, %v325_v63  ;;  %v347_v29 = vsel %vm346_vm2, %v345_v28, %v325_v63 }
 0xa15   :  { %v327_v1 = vsel %vm326_vm9, -3e+38, %v317_v58  ;;  %vm861_vm9 = vcmask 337168  }
 0xa16   :  { %v328_v2 = vsel %vm240_vm8, %v327_v1, -inf }
 0xa17   :  { %329 = vmax.xlane.f32.xlu1 %v328_v2 }
 0xaa4   :  { %v330_v3 = vpop.xlane.xlu1 %329 }
 0xaa5   :  { %vm331_vm13 = vcmp.eq.f32.partialorder %v327_v1, %v330_v3  ;;  %v1205_v13 = vsel %vm348_vm3, %v355_v12, %v330_v3 }
 0xaa6   :  { %v332_v6 = vsel %vm331_vm13, %v1144_v17, 16.0  ;;  %994 = vtanh.f32 %v1205_v13 }
 0xaa7   :  { %v333_v8 = vsel %vm240_vm8, %v332_v6, inf }
 0xaa8   :  { %334 = vmin.xlane.f32.xlu0 %v333_v8 }
 0xab0   :  { %v995_v14 = vpop.eup %994 }
 0xab1   :  { %v389_v16 = vrot.slane %v995_v14, %v1097_v22  ;;  %v396_v35 = vrot.slane %v995_v14, %v1130_v45 }
 0xabe   :  { %391 = vbcast.lane.b32.xlu0 %v389_v16, 256 }
 0xb35   :  { %v335_v26 = vpop.xlane.xlu0 %334 }
 0xb36   :  { %v1223_v27 = vsel %vm348_vm3, %v347_v29, %v335_v26 }
 0xb37   :  { %v368_v32 = vrot.slane %v1223_v27, %v1097_v22  ;;  %v375_v34 = vrot.slane %v1223_v27, %v1130_v45 }
 0xb39   :  { %370 = vbcast.lane.b32.xlu1 %v368_v32, 256  ;;  %v392_v38 = vpop.permute.xlu0 %391 }
 0xb3d   :  { %377 = vbcast.lane.b32.xlu1 %v375_v34, 256  ;;  %v358_v34 = vsel %vm357_vm7, %v1205_v13, 0.0 }
 0xb41   :  { %398 = vbcast.lane.b32.xlu1 %v396_v35, 256 }
 0xb45   :  { %730 = vrot.lane.b32.xlu1 %v1261_v44, %s1019_s10 }
 0xbab   :  { %v371_v36 = vpop.permute.xlu1 %370 }
 0xbac   :  { %vm379_vm4 = vcmp.eq.f32.partialorder %v371_v36, %v1144_v17 }
 0xbad   :  { %v873_v22 = vsel %vm379_vm4, 1.0, %v1016_v4 }
 0xbae   :  { %v400_v39 = vmul.f32 %v873_v22, %v392_v38 }
 0xbaf   :  { %v378_v40 = vpop.permute.xlu1 %377 }
 0xbb0   :  { %vm380_vm6 = vcmp.eq.f32.partialorder %v378_v40, %v1144_v17  ;;  %924 = vmatmul.mubr.msk.f32.vlgmr.msra.gmra.mrb[0].mxu1 %vm402_vm5, %v400_v39  ;;  %v31_v17 = vld [vmem:[%s1310_s4 + $0x48] sm:$0xff]  ;;  %s1020_s4 = smov 120  }
 0xbb1   :  { %965 = vmatpush3.bf16.msra.mxu1 %v964_v37  ;;  %930 = vmatprep.mubr.msk.f32.mxu1 %vm1015_vm0, %v1016_v4  ;;  %v874_v45 = vsel %vm380_vm6, 1.0, %v1016_v4  ;;  %v1256_v4 = vld [vmem:[%s1315_s3] sm:$0xff]  ;;  %vm632_vm0 = vcmask 64512  }
 0xbb2   :  { %944 = vmatprep.subr.mxu1 %v31_v17  ;;  %728 = vrot.lane.b32.xlu0 %v1256_v4, %s1019_s10 }
 0xbb3   :  { %v399_v41 = vpop.permute.xlu1 %398 }
 0xbb4   :  { %v401_v42 = vmul.f32 %v874_v45, %v399_v41 }
 0xbb6   :  { %931 = vmatmul.mubr.msk.f32.vlgmr.msra.gmra.mrb[2].mxu1 %vm402_vm5, %v401_v42 }
 0xbb7   :  { %945 = vmatpush3.msra.mxu1 %v31_v17  ;;  %946 = vmatprep.mubr.msk.f32.mxu1 %vm632_vm0, %v1256_v4  ;;  %v731_v3 = vpop.permute.xlu1 %730 }
 0xbb8   :  { %949 = vmatprep.subr.mxu1 %v32_v52 }
 0xbba   :  { %947 = vmatmul.mubr.msk.f32.vlgmr.msra.gmra.mrb[4].mxu1 %vm632_vm0, %v1261_v44 }
 0xbbb   :  { %950 = vmatpush3.msra.mxu1 %v32_v52 }
 0xc24   :  { %v729_v5 = vpop.permute.xlu0 %728 }
 0xc83   :  { %v472_v46 = vpop.f32.mrb[0].mxu1 }
 0xc84   :  { %v925_v47 = vpop.f32.mrb[1].mxu1  ;;  %941 = vmatprep.mubr.msk.f32.mxu0 %vm39_vm1, %v472_v46 }
 0xc89   :  { %v545_v48 = vpop.f32.mrb[2].mxu1 }
 0xc8a   :  { %v932_v49 = vpop.f32.mrb[3].mxu1  ;;  %942 = vmatmul.mubr.msk.f32.vlgmr.msra.gmra.mrb[2].mxu0 %vm39_vm1, %v545_v48  ;;  %vm853_vm1 = vcmask 263424  }
 0xc8d   :  { %v948_v50 = vpop.f32.mrb[4].mxu1 }
 0xc8e   :  { %v705_v51 = vpop.f32.mrb[5].mxu1 }
 0xd5d   :  { %v943_v54 = vpop.f32.mrb[2].mxu0 }
 0xd5e   :  { %v629_v55 = vadd.f32 %v943_v54, %v33_v53  ;;  %v623_v56 = vpop.f32.mrb[3].mxu0 }
 0xd5f   :  { %v624_v57 = vadd.f32 %v623_v56, %v33_v53 }
 0xd60   :  { %v715_v58 = vadd.f32 %v948_v50, %v629_v55 }
 0xd61   :  { %v714_v59 = vadd.f32 %v705_v51, %v624_v57 }
 0xd62   :  { %v882_v60 = vmul.f32 -1.442695, %v715_v58 }
 0xd63   :  { %v881_v61 = vmul.f32 -1.442695, %v714_v59 }
 0xd64   :  { %996 = vpow2.f32 %v882_v60 }
 0xd65   :  { %998 = vpow2.f32 %v881_v61 }
 0xd6e   :  { %v997_v62 = vpop.eup %996 }
 0xd6f   :  { %v999_v63 = vpop.eup %998  ;;  %v723_v1 = vadd.f32 1.0, %v997_v62 }
 0xd70   :  { %v722_v2 = vadd.f32 1.0, %v999_v63 }
 0xd71   :  { %1000 = vrcp.f32 %v723_v1 }
 0xd72   :  { %1002 = vrcp.f32 %v722_v2 }
 0xd73   :  { %1004 = vpow2.f32 %v245_v11 }
 0xd7b   :  { %v1277_v6 = vpop.eup %1000 }
 0xd7c   :  { %v1003_v7 = vpop.eup %1002  ;;  %v735_v8 = vmul.f32 %v1277_v6, %v731_v3  ;;  %v834_v43 = vsub.f32 1.0, %v1277_v6 }
 0xd7d   :  { %v734_v9 = vmul.f32 %v1003_v7, %v729_v5  ;;  %v1005_v12 = vpop.eup %1004  ;;  %v833_v42 = vsub.f32 1.0, %v1003_v7 }
 0xd7e   :  { %740 = vrot.lane.b32.xlu1 %v735_v8, %s1020_s4  ;;  %v247_v14 = vsel %vm240_vm8, %v1005_v12, 0.0 }
 0xd7f   :  { %738 = vrot.lane.b32.xlu0 %v734_v9, %s1020_s4  ;;  %v835_v31 = vmul.f32 %v833_v42, %v1256_v4 }
 0xd9e   :  { %248 = vadd.xlane.f32.xlu0 %v247_v14 }
 0xdf0   :  { %v741_v19 = vpop.permute.xlu1 %740 }
 0xdf1   :  { %v739_v16 = vpop.permute.xlu0 %738 }
 0xdf2   :  { %951 = vmatprep.mubr.msk.f32.mxu1 %vm632_vm0, %v739_v16 }
 0xdf3   :  { %952 = vmatmul.mubr.msk.f32.vlgmr.msra.gmra.mrb[6].mxu1 %vm632_vm0, %v741_v19 }
 0xe2b   :  { %v249_v20 = vpop.xlane.xlu0 %248 }
 0xe2c   :  { %1006 = vlog2.f32 %v249_v20 }
 0xe2d   :  { %1008 = vrcp.f32 %v249_v20 }
 0xe36   :  { %v1007_v23 = vpop.eup %1006 }
 0xe37   :  { %v1009_v24 = vpop.eup %1008  ;;  %v251_v25 = vmul.f32 0.6931472, %v1007_v23 }
 0xe38   :  { %v253_v28 = vmul.f32 %v1009_v24, %v1005_v12 }
 0xe39   :  { %v254_v15 = vsub.f32 %v244_v10, %v251_v25 }
 0xe3b   :  { %v255_v29 = vmul.f32 %v254_v15, %v253_v28 }
 0xe3d   :  { %v256_v26 = vsel %vm240_vm8, %v255_v29, 0.0  ;;  %vm855_vm8 = vcmask 271624  }
 0xe3e   :  { %257 = vadd.xlane.f32.xlu0 %v256_v26 }
 0xec6   :  { %v953_v0 = vpop.f32.mrb[6].mxu1 }
 0xec7   :  { %v812_v21 = vpop.f32.mrb[7].mxu1 }
 0xec8   :  { %823 = vrot.lane.b32.xlu1 %v812_v21, %s1021_s13 }
 0xecb   :  { %v258_v32 = vpop.xlane.xlu0 %257 }
 0xecc   :  { %v259_v33 = vsub.f32 0.0, %v258_v32  ;;  %825 = vrot.lane.b32.xlu1 %v953_v0, %s1021_s13 }
 0xece   :  { %854 = vst.msk [vmem:[%s1312_s5] sm:$0x3] %vm853_vm1, %v259_v33 }
 0xef0   :  { %359 = vadd.xlane.f32.xlu1 %v358_v34 }
 0xf3a   :  { %v824_v35 = vpop.permute.xlu1 %823 }
 0xf3b   :  { %v829_v36 = vadd.f32 %v824_v35, %v624_v57 }
 0xf3d   :  { %1010 = vtanh.f32 %v829_v36 }
 0xf3e   :  { %v826_v37 = vpop.permute.xlu1 %825 }
 0xf3f   :  { %v830_v38 = vadd.f32 %v826_v37, %v629_v55 }
 0xf41   :  { %1012 = vtanh.f32 %v830_v38 }
 0xf47   :  { %v1011_v22 = vpop.eup %1010 }
 0xf48   :  { %839 = vrot.lane.b32.xlu0 %v1011_v22, %s1022_s16 }
 0xf4b   :  { %v1013_v39 = vpop.eup %1012 }
 0xf4c   :  { %841 = vrot.lane.b32.xlu1 %v1013_v39, %s1022_s16  ;;  %858 = vrot.lane.b32.xlu0 %v1223_v27, %s1023_s17 }
 0xf7d   :  { %v360_v40 = vpop.xlane.xlu1 %359 }
 0xf7e   :  { %v362_v45 = vmul.f32 0.125, %v360_v40 }
 0xf80   :  { %v363_v41 = vsub.f32 %v362_v45, %v1146_v18  ;;  %v836_v18 = vmul.f32 %v834_v43, %v1261_v44 }
 0xf82   :  { %v364_v13 = vsub.f32 %v363_v41, %v251_v25 }
 0xf84   :  { %856 = vst.msk [vmem:[%s1312_s5] sm:$0x3] %vm855_vm8, %v364_v13 }
 0xfba   :  { %v840_v30 = vpop.permute.xlu0 %839 }
 0xfbb   :  { %v845_v17 = vmul.f32 %v1003_v7, %v840_v30 }
 0xfbd   :  { %v847_v46 = vadd.f32 %v845_v17, %v835_v31 }
 0xfbe   :  { %v842_v27 = vpop.permute.xlu1 %841  ;;  %v859_v47 = vpop.permute.xlu0 %858 }
 0xfbf   :  { %849 = vst.msk [vmem:[%s1316_s6] sm:$0xff] %vm632_vm0, %v847_v46  ;;  %v846_v48 = vmul.f32 %v1277_v6, %v842_v27 }
 0xfc0   :  { %862 = vst.msk [vmem:[%s1312_s5] sm:$0x3] %vm861_vm9, %v859_v47 }
 0xfc1   :  { %v848_v4 = vadd.f32 %v846_v48, %v836_v18 }
 0xfc3   :  { %850 = vst.msk [vmem:[%s1316_s6 + $0x8] sm:$0xff] %vm632_vm0, %v848_v4 }

</bundles_post_ra>
